<compile_context>
chip_gen: v7x
topology: tpu7x:2x2x1
jax: 0.10.0
libtpu: 0.0.40
codegen_flags: <defaults>
</compile_context>

<pallas_src>
import jax
import jax.numpy as jnp
from jax.experimental import pallas as pl
from jax.experimental.pallas import tpu as pltpu


def cnn_kernel(x_ref, wc_ref, wy_ref, by_ref, out_ref, cmax_ref):
    TB, TS, KP = x_ref.shape          # lane-dense im2col chunk (bf16)
    HP = wc_ref.shape[1]              # lane-padded hidden width (128)
    j = pl.program_id(1)              # sequence-chunk index (reduction axis)

    @pl.when(j == 0)
    def _():
        # ReLU makes every pooled value >= 0, so 0 is a valid -inf substitute.
        cmax_ref[...] = jnp.zeros_like(cmax_ref)

    # Fused conv: one K=128 MXU GEMM per chunk.  The 3 taps AND the conv bias
    # (via the constant-1 lane at K index 3*D) are all inside this matmul.
    m = jnp.dot(x_ref[...].reshape(TB * TS, KP), wc_ref[...],
                preferred_element_type=jnp.float32)          # (TB*TS, HP) f32
    p = jnp.maximum(m, 0.0)                                  # ReLU
    # MaxPool1d over the full sequence as a running max across chunks.
    # (Zero-padded sequence rows contribute exactly 0, which never changes
    #  the max of non-negative ReLU outputs.)
    cmax_ref[...] = jnp.maximum(cmax_ref[...],
                                jnp.max(p.reshape(TB, TS, HP), axis=1))

    @pl.when(j == pl.num_programs(1) - 1)
    def _():
        c = cmax_ref[...]                                    # (TB, HP) f32
        # Final linear (H->O, lane-padded) + numerically stable softmax.
        # Padded class lanes have a -1e30 bias, so exp() underflows to 0.
        y = jnp.dot(c.astype(wy_ref.dtype), wy_ref[...],
                    preferred_element_type=jnp.float32) + by_ref[...]
        y = y - jnp.max(y, axis=-1, keepdims=True)
        ex = jnp.exp(y)
        out_ref[...] = ex / jnp.sum(ex, axis=-1, keepdims=True)


@jax.jit
def cnn_forward(x_ids, emb_table, conv_w, conv_b, yc_w, yc_b):
    B, S = x_ids.shape
    D = emb_table.shape[1]
    H = conv_w.shape[0]
    O = yc_w.shape[0]
    HP = 128                          # lane-padded hidden channels
    OP = 128                          # lane-padded output classes
    KP = 128                          # lane-padded im2col width (3*D + 1 -> 128)
    TS = 32                           # sequence chunk (multiple of 16: free reshapes)

    def rup(x, m):
        return -(-x // m) * m

    # ---- batch tiling: multiple of 8, >= 2 tiles when worthwhile (v7x has
    #      2 TensorCores and the batch axis is the "parallel" one) ------------
    n_tiles = max(1, -(-B // 128))    # cap TB at 128
    if n_tiles == 1 and B > 8:
        n_tiles = 2
    TB = rup(-(-B // n_tiles), 8)
    Bp = rup(B, TB)
    SP = rup(S, TS)                   # padded seq rows are all-zero -> harmless

    if Bp != B:
        x_ids = jnp.pad(x_ids, ((0, Bp - B), (0, 0)))        # pad rows: id 0

    # ---- glue: embedding gather (then cast to bf16) + lane-dense im2col -----
    # Lane layout per row t:  [e[t-1] | e[t] | e[t+1] | 1 | zeros]  (K = 128)
    e = emb_table[x_ids].astype(jnp.bfloat16)                 # (Bp, S, D)
    e_seq = jnp.pad(e, ((0, 0), (1, 1), (0, 0)))              # (Bp, S+2, D)
    xw = jnp.concatenate(
        [e_seq[:, 0:S], e_seq[:, 1:S + 1], e_seq[:, 2:S + 2],
         jnp.ones((Bp, S, 1), jnp.bfloat16)], axis=-1)        # (Bp, S, 3D+1)
    xw = jnp.pad(xw, ((0, 0), (0, SP - S), (0, KP - (3 * D + 1))))  # (Bp, SP, KP)

    # ---- fused conv weight: 3 taps stacked along K, conv bias in row 3D -----
    w_taps = conv_w.reshape(H, 3, D)                          # (H, 3, D)
    wc = jnp.concatenate(
        [w_taps[:, 0, :].T, w_taps[:, 1, :].T, w_taps[:, 2, :].T,
         conv_b.reshape(1, H)], axis=0)                       # (3D+1, H) f32
    wc = jnp.pad(wc, ((0, KP - (3 * D + 1)), (0, HP - H))).astype(jnp.bfloat16)

    wy = jnp.pad(yc_w.T.astype(jnp.bfloat16), ((0, HP - H), (0, OP - O)))
    by = jnp.concatenate(
        [yc_b.astype(jnp.float32),
         jnp.full((OP - O,), -1e30, jnp.float32)]).reshape(1, OP)

    grid = (Bp // TB, SP // TS)
    out = pl.pallas_call(
        cnn_kernel,
        out_shape=jax.ShapeDtypeStruct((Bp, OP), jnp.float32),
        grid_spec=pltpu.PrefetchScalarGridSpec(
            num_scalar_prefetch=0,
            grid=grid,
            in_specs=[
                pl.BlockSpec((TB, TS, KP), lambda i, j: (i, j, 0)),  # activations
                pl.BlockSpec((KP, HP), lambda i, j: (0, 0)),         # fused conv W+b
                pl.BlockSpec((HP, OP), lambda i, j: (0, 0)),         # linear W
                pl.BlockSpec((1, OP), lambda i, j: (0, 0)),          # linear b
            ],
            out_specs=pl.BlockSpec((TB, OP), lambda i, j: (i, 0)),
            scratch_shapes=[pltpu.VMEM((TB, HP), jnp.float32)],      # running max
        ),
        compiler_params=pltpu.CompilerParams(
            dimension_semantics=("parallel", "arbitrary"),
            vmem_limit_bytes=32 * 1024 * 1024,
        ),
    )(xw, wc, wy, by)

    return out[:B, :O]


def cnn_reference(x_ids, emb_table, conv_w, conv_b, yc_w, yc_b):
    """Pure-JAX f32 reference of the PyTorch forward pass."""
    B, S = x_ids.shape
    D = emb_table.shape[1]
    H = conv_w.shape[0]
    e = emb_table[x_ids]                                    # (B, S, D)
    e_pad = jnp.pad(e, ((0, 0), (1, 1), (0, 0)))            # (B, S+2, D)
    xw = jnp.concatenate(
        [e_pad[:, 0:S], e_pad[:, 1:S + 1], e_pad[:, 2:S + 2]], axis=-1)
    s = jnp.einsum("bsk,hk->bsh", xw, conv_w.reshape(H, 3 * D)) + conv_b
    c = jnp.max(jnp.maximum(s, 0.0), axis=1)                # (B, H)
    y = c @ yc_w.T + yc_b
    return jax.nn.softmax(y, axis=-1)


if __name__ == "__main__":
    key = jax.random.PRNGKey(0)
    B, S = 2, 120          # MaxPool1d(120) implies sequence length 120
    vocab_size = 100
    data_size = 32         # D
    hidden_size = 16       # H
    output_size = 4        # O

    ks = jax.random.split(key, 6)
    x_ids = jax.random.randint(ks[0], (B, S), 0, vocab_size, dtype=jnp.int32)
    emb_table = jax.random.normal(ks[1], (vocab_size, data_size), jnp.float32)
    conv_w = 0.1 * jax.random.normal(ks[2], (hidden_size, 1, 3, data_size),
                                     jnp.float32)
    conv_b = 0.1 * jax.random.normal(ks[3], (hidden_size,), jnp.float32)
    yc_w = 0.1 * jax.random.normal(ks[4], (output_size, hidden_size), jnp.float32)
    yc_b = 0.1 * jax.random.normal(ks[5], (output_size,), jnp.float32)

    out = cnn_forward(x_ids, emb_table, conv_w, conv_b, yc_w, yc_b)
    jax.block_until_ready(out)

    ref = cnn_reference(x_ids, emb_table, conv_w, conv_b, yc_w, yc_b)

    assert out.shape == (B, output_size)
    # softmax rows sum to ~1 (exact reciprocal now; bf16 operands -> tiny slack)
    assert jnp.allclose(jnp.sum(out, axis=1), 1.0, atol=1e-3)
    assert jnp.allclose(out, ref, atol=3e-2)
    print("KERNEL_OK")
</pallas_src>

<mosaic_0001>
module attributes {stable_mosaic.version = 11 : i64} {
  func.func @cnn_kernel(%arg0: i32, %arg1: i32, %arg2: memref<8x32x128xbf16, #tpu.memory_space<vmem>>, %arg3: memref<128x128xbf16, #tpu.memory_space<vmem>>, %arg4: memref<128x128xbf16, #tpu.memory_space<vmem>>, %arg5: memref<1x128xf32, #tpu.memory_space<vmem>>, %arg6: memref<8x128xf32, #tpu.memory_space<vmem>>, %arg7: memref<8x128xf32, #tpu.memory_space<vmem>>) attributes {dimension_semantics = [#tpu.dimension_semantics<parallel>, #tpu.dimension_semantics<arbitrary>], iteration_bounds = array<i64: 1, 4>, scalar_prefetch = 0 : i64, scratch_operands = 1 : i64, tpu.core_type = #tpu.core_type<tc>, window_params = [{transform_indices = @transform_0, window_bounds = array<i64: 8, 32, 128>}, {pipeline_mode = #tpu.pipeline_mode<synchronous>, transform_indices = @transform_1, window_bounds = array<i64: 128, 128>}, {pipeline_mode = #tpu.pipeline_mode<synchronous>, transform_indices = @transform_2, window_bounds = array<i64: 128, 128>}, {pipeline_mode = #tpu.pipeline_mode<synchronous>, transform_indices = @transform_3, window_bounds = array<i64: 1, 128>}, {transform_indices = @transform_4, window_bounds = array<i64: 8, 128>}]} {
    %c0_i32 = arith.constant 0 : i32
    %0 = arith.cmpi eq, %arg1, %c0_i32 : i32
    %1 = arith.extui %0 : i1 to i32
    %c0_i32_0 = arith.constant 0 : i32
    %2 = arith.cmpi ne, %1, %c0_i32_0 : i32
    scf.if %2 {
      %cst_12 = arith.constant 0.000000e+00 : f32
      %17 = vector.broadcast %cst_12 : f32 to vector<8x128xf32>
      %c0_13 = arith.constant 0 : index
      %c0_14 = arith.constant 0 : index
      %18 = vector.load %arg7[%c0_13, %c0_14] : memref<8x128xf32, #tpu.memory_space<vmem>>, vector<8x128xf32>
      tpu.vector_store %arg7[%c0_13, %c0_14], %17 {strides = array<i32>} : memref<8x128xf32, #tpu.memory_space<vmem>>, vector<8x128xf32>,
    } else {
    }
    %c0 = arith.constant 0 : index
    %c0_1 = arith.constant 0 : index
    %c0_2 = arith.constant 0 : index
    %3 = vector.load %arg2[%c0, %c0_1, %c0_2] : memref<8x32x128xbf16, #tpu.memory_space<vmem>>, vector<8x32x128xbf16>
    %4 = vector.shape_cast %3 : vector<8x32x128xbf16> to vector<256x128xbf16>
    %c0_3 = arith.constant 0 : index
    %c0_4 = arith.constant 0 : index
    %5 = vector.load %arg3[%c0_3, %c0_4] : memref<128x128xbf16, #tpu.memory_space<vmem>>, vector<128x128xbf16>
    %cst = arith.constant dense<0.000000e+00> : vector<256x128xf32>
    %6 = tpu.matmul %4, %5, %cst {dimension_numbers = #tpu.dot_dimension_numbers<[1], [0], [0], [1], [0, 0, 1, 1], [], []>} : vector<256x128xbf16>, vector<128x128xbf16>, vector<256x128xf32> -> vector<256x128xf32>
    %cst_5 = arith.constant 0.000000e+00 : f32
    %7 = vector.broadcast %cst_5 : f32 to vector<256x128xf32>
    %8 = arith.maximumf %6, %7 : vector<256x128xf32>
    %c0_6 = arith.constant 0 : index
    %c0_7 = arith.constant 0 : index
    %9 = vector.load %arg7[%c0_6, %c0_7] : memref<8x128xf32, #tpu.memory_space<vmem>>, vector<8x128xf32>
    %10 = vector.shape_cast %8 : vector<256x128xf32> to vector<8x32x128xf32>
    %cst_8 = arith.constant dense<0xFF800000> : vector<8x128xf32>
    %11 = vector.multi_reduction <maximumf>, %10, %cst_8 [1] : vector<8x32x128xf32> to vector<8x128xf32>
    %12 = arith.maximumf %9, %11 : vector<8x128xf32>
    %c0_9 = arith.constant 0 : index
    %c0_10 = arith.constant 0 : index
    %13 = vector.load %arg7[%c0_9, %c0_10] : memref<8x128xf32, #tpu.memory_space<vmem>>, vector<8x128xf32>
    tpu.vector_store %arg7[%c0_9, %c0_10], %12 {strides = array<i32>} : memref<8x128xf32, #tpu.memory_space<vmem>>, vector<8x128xf32>,
    %c3_i32 = arith.constant 3 : i32
    %14 = arith.cmpi eq, %arg1, %c3_i32 : i32
    %15 = arith.extui %14 : i1 to i32
    %c0_i32_11 = arith.constant 0 : i32
    %16 = arith.cmpi ne, %15, %c0_i32_11 : i32
    scf.if %16 {
      %c0_12 = arith.constant 0 : index
      %c0_13 = arith.constant 0 : index
      %17 = vector.load %arg7[%c0_12, %c0_13] : memref<8x128xf32, #tpu.memory_space<vmem>>, vector<8x128xf32>
      %18 = arith.truncf %17 : vector<8x128xf32> to vector<8x128xbf16>
      %c0_14 = arith.constant 0 : index
      %c0_15 = arith.constant 0 : index
      %19 = vector.load %arg4[%c0_14, %c0_15] : memref<128x128xbf16, #tpu.memory_space<vmem>>, vector<128x128xbf16>
      %cst_16 = arith.constant dense<0.000000e+00> : vector<8x128xf32>
      %20 = tpu.matmul %18, %19, %cst_16 {dimension_numbers = #tpu.dot_dimension_numbers<[1], [0], [0], [1], [0, 0, 1, 1], [], []>} : vector<8x128xbf16>, vector<128x128xbf16>, vector<8x128xf32> -> vector<8x128xf32>
      %c0_17 = arith.constant 0 : index
      %c0_18 = arith.constant 0 : index
      %21 = vector.load %arg5[%c0_17, %c0_18] : memref<1x128xf32, #tpu.memory_space<vmem>>, vector<1x128xf32>
      %22 = vector.broadcast %21 : vector<1x128xf32> to vector<8x128xf32>
      %23 = arith.addf %20, %22 : vector<8x128xf32>
      %cst_19 = arith.constant dense<0xFF800000> : vector<8xf32>
      %24 = vector.multi_reduction <maximumf>, %23, %cst_19 [1] : vector<8x128xf32> to vector<8xf32>
      %25 = vector.shape_cast %24 : vector<8xf32> to vector<8x1xf32>
      %26 = vector.broadcast %25 : vector<8x1xf32> to vector<8x128xf32>
      %27 = arith.subf %23, %26 : vector<8x128xf32>
      %28 = math.exp %27 : vector<8x128xf32>
      %cst_20 = arith.constant dense<0.000000e+00> : vector<8xf32>
      %29 = vector.multi_reduction <add>, %28, %cst_20 [1] : vector<8x128xf32> to vector<8xf32>
      %30 = vector.shape_cast %29 : vector<8xf32> to vector<8x1xf32>
      %31 = vector.broadcast %30 : vector<8x1xf32> to vector<8x128xf32>
      %32 = arith.divf %28, %31 : vector<8x128xf32>
      %c0_21 = arith.constant 0 : index
      %c0_22 = arith.constant 0 : index
      %33 = vector.load %arg6[%c0_21, %c0_22] : memref<8x128xf32, #tpu.memory_space<vmem>>, vector<8x128xf32>
      tpu.vector_store %arg6[%c0_21, %c0_22], %32 {strides = array<i32>} : memref<8x128xf32, #tpu.memory_space<vmem>>, vector<8x128xf32>,
    } else {
    }
    return
  }
  func.func @transform_0(%arg0: i32, %arg1: i32) -> (i32, i32, i32) {
    %c0_i32 = arith.constant 0 : i32
    %c0_i32_0 = arith.constant 0 : i32
    return %arg0, %arg1, %c0_i32 : i32, i32, i32
  }
  func.func @transform_1(%arg0: i32, %arg1: i32) -> (i32, i32) {
    %c0_i32 = arith.constant 0 : i32
    %c0_i32_0 = arith.constant 0 : i32
    %c0_i32_1 = arith.constant 0 : i32
    return %c0_i32, %c0_i32_0 : i32, i32
  }
  func.func @transform_2(%arg0: i32, %arg1: i32) -> (i32, i32) {
    %c0_i32 = arith.constant 0 : i32
    %c0_i32_0 = arith.constant 0 : i32
    %c0_i32_1 = arith.constant 0 : i32
    return %c0_i32, %c0_i32_0 : i32, i32
  }
  func.func @transform_3(%arg0: i32, %arg1: i32) -> (i32, i32) {
    %c0_i32 = arith.constant 0 : i32
    %c0_i32_0 = arith.constant 0 : i32
    %c0_i32_1 = arith.constant 0 : i32
    return %c0_i32, %c0_i32_0 : i32, i32
  }
  func.func @transform_4(%arg0: i32, %arg1: i32) -> (i32, i32) {
    %c0_i32 = arith.constant 0 : i32
    %c0_i32_0 = arith.constant 0 : i32
    return %arg0, %c0_i32 : i32, i32
  }
}

</mosaic_0001>

<bundles_post_ra>
// kernel: cnn_forward.1
= control target key start
LH: loop header
LB: loop body
LE: loop exit
PB: predicated region body
PF: predicated region fallthrough
CT: control target
= control target key end

     0   :  { %s1376_s15 = smov 0   ;;  %s1378_s16 = smov 0   ;;  %s1533_s0 = inlined_call_operand.vmem [shape: bf16[8,128,128], index: 0, kind: input, shape index: {}]   ;;  %s1534_s1 = inlined_call_operand.vmem [shape: bf16[128,128], index: 1, kind: input, shape index: {}]   ;;  %s1535_s2 = inlined_call_operand.vmem [shape: bf16[128,128], index: 2, kind: input, shape index: {}]   ;;  %s1536_s3 = inlined_call_operand.vmem [shape: f32[1,128], index: 3, kind: input, shape index: {}]   ;;  %s1537_s4 = inlined_call_operand.vmem [shape: f32[8,128], index: 4, kind: output, shape index: {}]  }
   0x1   :  { %s1380_s17 = smov 0   ;;  %s1382_s18 = smov 0  }
   0x2   :  { %s1384_s19 = smov 0  }
   0x3 LB: > { %s23_s20 = sadd.s32 1, %s1342_s18  ;;  %p42_p1 = scmp.ne.s32.totalorder %s1334_s16, %s1330_s15  ;;  %s1346_s19 = sphi %s1384_s19, %s14_s19   ;;  %s1342_s18 = sphi %s1382_s18, %s1541_s18   ;;  %s1338_s17 = sphi %s1380_s17, %s1540_s17   ;;  %s1334_s16 = sphi %s1378_s16, %s1539_s16   ;;  %s1330_s15 = sphi %s1376_s15, %s1538_s15  }
   0x4   : > { %p24_p0 = scmp.ge.s32.totalorder %s23_s20, 4  ;;  %p43_p2 = scmp.eq.s32.totalorder %s1346_s19, 0 }
   0x5   : > { %s35_s22 = sadd.s32 1, %s1334_s16  ;;  %p1067_p5 = scmp.ge.s32.totalorder %s1346_s19, 4 }
   0x6   : > { %s1543_s20 = smov (%p24_p0, %s23_s20), 0  ;;  %p44_p3 = por %p43_p2, %p42_p1 }
   0x7   : > { %s31_s21 = ssub.s32 %s1342_s18, %s1543_s20  ;;  %166 = sbr.rel (%p1067_p5) target bundleno = 26 (0x1a), region = 28 }
   0x8   : > { %p33_p4 = scmp.eq.s32.totalorder %s31_s21, 0 }
   0xa   : > { %s1411_s23 = scalar_select %p33_p4, %s1334_s16, %s35_s22  }
   0xe   : > { %169 = sbr.rel (!%p44_p3) target bundleno = 26 (0x1a), region = 32  ;;  %s171_s24 = sand.u32 (%p44_p3), 1, %s1334_s16  }
   0xf   : > { %s1111_s25 = sshll.u32 (%p44_p3), %s1342_s18, 4  ;;  %s1068_s26 = sshll.u32 (%p44_p3), %s171_s24, 7 }
  0x10   : > { %s1419_s29 = scalar_lea.vmem (%p44_p3), %s1533_s0, %s1111_s25  ;;  %s173_s30 = scalar_lea.vmem (%p44_p3), [#allocation3], %s1068_s26 }
  0x11   : > { %v195_v0 = vld [vmem:[%s1419_s29] sm:$0xff] (%p44_p3)   ;;  %v199_v1 = vld [vmem:[%s1419_s29 + $0x8] sm:$0xff] (%p44_p3)  }
  0x12   : > { %v203_v2 = vld [vmem:[%s1419_s29 + $0x40] sm:$0xff] (%p44_p3)   ;;  %196 = vst [vmem:[%s173_s30] sm:$0xff] (%p44_p3), %v195_v0   ;;  %200 = vst [vmem:[%s173_s30 + $0x8] sm:$0xff] (%p44_p3), %v199_v1   ;;  %v207_v3 = vld [vmem:[%s1419_s29 + $0x48] sm:$0xff] (%p44_p3)  }
  0x13   : > { %204 = vst [vmem:[%s173_s30 + $0x10] sm:$0xff] (%p44_p3), %v203_v2   ;;  %v211_v4 = vld [vmem:[%s1419_s29 + $0x80] sm:$0xff] (%p44_p3)   ;;  %v215_v5 = vld [vmem:[%s1419_s29 + $0x88] sm:$0xff] (%p44_p3)   ;;  %208 = vst [vmem:[%s173_s30 + $0x18] sm:$0xff] (%p44_p3), %v207_v3  }
  0x14   : > { %212 = vst [vmem:[%s173_s30 + $0x20] sm:$0xff] (%p44_p3), %v211_v4   ;;  %216 = vst [vmem:[%s173_s30 + $0x28] sm:$0xff] (%p44_p3), %v215_v5   ;;  %v219_v6 = vld [vmem:[%s1419_s29 + $0xc0] sm:$0xff] (%p44_p3)   ;;  %v223_v7 = vld [vmem:[%s1419_s29 + $0xc8] sm:$0xff] (%p44_p3)  }
  0x15   : > { %v227_v8 = vld [vmem:[%s1419_s29 + $0x100] sm:$0xff]   ;;  %220 = vst [vmem:[%s173_s30 + $0x30] sm:$0xff] %v219_v6   ;;  %224 = vst [vmem:[%s173_s30 + $0x38] sm:$0xff] %v223_v7   ;;  %v231_v9 = vld [vmem:[%s1419_s29 + $0x108] sm:$0xff]  }
  0x16   : > { %228 = vst [vmem:[%s173_s30 + $0x40] sm:$0xff] %v227_v8   ;;  %v235_v10 = vld [vmem:[%s1419_s29 + $0x140] sm:$0xff]   ;;  %v239_v11 = vld [vmem:[%s1419_s29 + $0x148] sm:$0xff]   ;;  %232 = vst [vmem:[%s173_s30 + $0x48] sm:$0xff] %v231_v9  }
  0x17   : > { %236 = vst [vmem:[%s173_s30 + $0x50] sm:$0xff] %v235_v10   ;;  %240 = vst [vmem:[%s173_s30 + $0x58] sm:$0xff] %v239_v11   ;;  %v243_v12 = vld [vmem:[%s1419_s29 + $0x180] sm:$0xff]   ;;  %v247_v13 = vld [vmem:[%s1419_s29 + $0x188] sm:$0xff]  }
  0x18   : > { %v251_v14 = vld [vmem:[%s1419_s29 + $0x1c0] sm:$0xff]   ;;  %244 = vst [vmem:[%s173_s30 + $0x60] sm:$0xff] %v243_v12   ;;  %248 = vst [vmem:[%s173_s30 + $0x68] sm:$0xff] %v247_v13   ;;  %v255_v15 = vld [vmem:[%s1419_s29 + $0x1c8] sm:$0xff]  }
  0x19   : > { %252 = vst [vmem:[%s173_s30 + $0x70] sm:$0xff] %v251_v14   ;;  %256 = vst [vmem:[%s173_s30 + $0x78] sm:$0xff] %v255_v15  }
  0x1a PF: > { %p1071_p6 = scmp.ge.s32.totalorder %s1346_s19, 1  ;;  %p344_p7 = scmp.lt.s32.totalorder %s1346_s19, 5 }
  0x1c   : > { %p345_p8 = pnand %p1071_p6, %p344_p7 }
  0x1d   : > { %s351_s5 = sand.u32 (!%p345_p8), 1, %s1330_s15   ;;  %p1073_p9 = scmp.ne.s32.totalorder (!%p345_p8), %s1338_s17, 0 }
  0x1e   : > { %348 = sbr.rel (%p345_p8) target bundleno = 880 (0x370), region = 73  ;;  %s1072_s6 = sshll.u32 (!%p345_p8), %s351_s5, 7 }
  0x1f   : > { %s1440_s7 = scalar_lea.vmem (!%p345_p8), [#allocation3], %s1072_s6 }
  0x25   : > { %385 = sbr.rel (%p1073_p9) target bundleno = 44 (0x2c), region = 81  ;;  %v1348_v16 = vmov (!%p1073_p9), 0.0  }
  0x26   : > { %386 = vst [vmem:[#allocation2] sm:$0xff] (!%p1073_p9), %v1348_v16 }
  0x2c PF: > { %v1272_v17 = vld [vmem:[%s1534_s1] sm:$0xff]   ;;  %v1273_v18 = vld [vmem:[%s1534_s1 + $0x8] sm:$0xff]   ;;  %v1274_v19 = vld [vmem:[%s1534_s1 + $0x10] sm:$0xff]   ;;  %vm853_vm0 = vcmask 1041409   ;;  %vm855_vm1 = vcmask 1042434   ;;  %vm857_vm2 = vcmask 1043459  }
  0x2d   : > { %1145 = vmatprep.subr.bf16.mxu0 %v1272_v17  ;;  %1213 = vmatprep.subr.bf16.mxu1 %v1272_v17  ;;  %v1275_v20 = vld [vmem:[%s1534_s1 + $0x18] sm:$0xff]   ;;  %v1280_v21 = vld [vmem:[%s1440_s7] sm:$0xff]   ;;  %v1276_v23 = vld [vmem:[%s1534_s1 + $0x20] sm:$0xff]   ;;  %vm859_vm3 = vcmask 1044484   ;;  %vm861_vm4 = vcmask 1045509   ;;  %vm863_vm5 = vcmask 1046534  }
  0x2e   : > { %1146 = vmatpush3.bf16.msra.mxu0 %v1272_v17  ;;  %1221 = vmatpush3.bf16.msra.mxu1 %v1272_v17  ;;  %v1281_v22 = vld [vmem:[%s1440_s7 + $0x40] sm:$0xff]   ;;  %v1278_v25 = vld [vmem:[%s1534_s1 + $0x30] sm:$0xff]   ;;  %v1279_v26 = vld [vmem:[%s1534_s1 + $0x38] sm:$0xff]   ;;  %vm865_vm6 = vcmask 1047559   ;;  %p1098_p10 = scmp.ne.s32.totalorder %s1338_s17, 3 }
  0x2f   : > { %1147 = vmatprep.subr.bf16.mxu0 %v1273_v18  ;;  %1214 = vmatprep.subr.bf16.mxu1 %v1273_v18  ;;  %v1277_v24 = vld [vmem:[%s1534_s1 + $0x28] sm:$0xff]   ;;  %v1282_v27 = vld [vmem:[%s1440_s7 + $0x8] sm:$0xff]   ;;  %v1284_v29 = vld [vmem:[%s1440_s7 + $0x10] sm:$0xff]   ;;  %vm1350_vm7 = vmmov (!%p1098_p10), 0  }
  0x30   : > { %1161 = vmatprep.mubr.bf16.mxu0 %v1280_v21  ;;  %1177 = vmatprep.mubr.bf16.mxu1 %v1281_v22  ;;  %v1283_v28 = vld [vmem:[%s1440_s7 + $0x48] sm:$0xff]   ;;  %v1285_v30 = vld [vmem:[%s1440_s7 + $0x50] sm:$0xff]   ;;  %v1286_v31 = vld [vmem:[%s1440_s7 + $0x18] sm:$0xff]  }
  0x31   : > { %v1287_v32 = vld [vmem:[%s1440_s7 + $0x58] sm:$0xff]   ;;  %v1288_v33 = vld [vmem:[%s1440_s7 + $0x20] sm:$0xff]   ;;  %v1290_v35 = vld [vmem:[%s1440_s7 + $0x28] sm:$0xff]  }
  0x32   : > { %1148 = vmatpush3.bf16.msra.mxu0 %v1273_v18  ;;  %1222 = vmatpush3.bf16.msra.mxu1 %v1273_v18  ;;  %v1289_v34 = vld [vmem:[%s1440_s7 + $0x60] sm:$0xff]   ;;  %v1291_v36 = vld [vmem:[%s1440_s7 + $0x68] sm:$0xff]   ;;  %v1292_v37 = vld [vmem:[%s1440_s7 + $0x30] sm:$0xff]  }
  0x33   : > { %1149 = vmatprep.subr.bf16.mxu0 %v1274_v19  ;;  %1215 = vmatprep.subr.bf16.mxu1 %v1274_v19  ;;  %v1293_v38 = vld [vmem:[%s1440_s7 + $0x70] sm:$0xff]   ;;  %v1294_v39 = vld [vmem:[%s1440_s7 + $0x38] sm:$0xff]  }
  0x34   : > { %v1295_v40 = vld [vmem:[%s1440_s7 + $0x78] sm:$0xff]  }
  0x36   : > { %1150 = vmatpush3.bf16.msra.mxu0 %v1274_v19  ;;  %1223 = vmatpush3.bf16.msra.mxu1 %v1274_v19 }
  0x37   : > { %1151 = vmatprep.subr.bf16.mxu0 %v1275_v20  ;;  %1216 = vmatprep.subr.bf16.mxu1 %v1275_v20 }
  0x3a   : > { %1152 = vmatpush3.bf16.msra.mxu0 %v1275_v20  ;;  %1224 = vmatpush3.bf16.msra.mxu1 %v1275_v20 }
  0x3b   : > { %1153 = vmatprep.subr.bf16.mxu0 %v1276_v23  ;;  %1217 = vmatprep.subr.bf16.mxu1 %v1276_v23 }
  0x3e   : > { %1154 = vmatpush3.bf16.msra.mxu0 %v1276_v23  ;;  %1225 = vmatpush3.bf16.msra.mxu1 %v1276_v23 }
  0x3f   : > { %1155 = vmatprep.subr.bf16.mxu0 %v1277_v24  ;;  %1218 = vmatprep.subr.bf16.mxu1 %v1277_v24 }
  0x42   : > { %1156 = vmatpush3.bf16.msra.mxu0 %v1277_v24  ;;  %1226 = vmatpush3.bf16.msra.mxu1 %v1277_v24 }
  0x43   : > { %1157 = vmatprep.subr.bf16.mxu0 %v1278_v25  ;;  %1219 = vmatprep.subr.bf16.mxu1 %v1278_v25 }
  0x46   : > { %1158 = vmatpush3.bf16.msra.mxu0 %v1278_v25  ;;  %1227 = vmatpush3.bf16.msra.mxu1 %v1278_v25 }
  0x47   : > { %1159 = vmatprep.subr.bf16.mxu0 %v1279_v26  ;;  %1220 = vmatprep.subr.bf16.mxu1 %v1279_v26 }
  0x4a   : > { %1160 = vmatpush3.bf16.msra.mxu0 %v1279_v26  ;;  %1228 = vmatpush3.bf16.msra.mxu1 %v1279_v26 }
  0x4d   : > { %1162 = vmatmul.mubr.bf16.vlgmr.msra.gmra.mrb[0].mxu0 %v1282_v27  ;;  %1178 = vmatmul.mubr.bf16.vlgmr.msra.gmra.mrb[0].mxu1 %v1283_v28 }
  0x4e   : > { %1165 = vmatprep.mubr.bf16.mxu0 %v1284_v29  ;;  %1181 = vmatprep.mubr.bf16.mxu1 %v1285_v30 }
  0x55   : > { %1166 = vmatmul.mubr.bf16.gmra.mrb[4].mxu0 %v1286_v31  ;;  %1182 = vmatmul.mubr.bf16.gmra.mrb[4].mxu1 %v1287_v32 }
  0x56   : > { %1169 = vmatprep.mubr.bf16.mxu0 %v1288_v33  ;;  %1185 = vmatprep.mubr.bf16.mxu1 %v1289_v34 }
  0x5d   : > { %1170 = vmatmul.mubr.bf16.gmra.mrb[8].mxu0 %v1290_v35  ;;  %1186 = vmatmul.mubr.bf16.gmra.mrb[8].mxu1 %v1291_v36 }
  0x5e   : > { %1173 = vmatprep.mubr.bf16.mxu0 %v1292_v37  ;;  %1189 = vmatprep.mubr.bf16.mxu1 %v1293_v38 }
  0x65   : > { %1174 = vmatmul.mubr.bf16.gmra.mrb[12].mxu0 %v1294_v39  ;;  %1190 = vmatmul.mubr.bf16.gmra.mrb[12].mxu1 %v1295_v40 }
 0x120   : > { %v1163_v41 = vpop.f32.mrb[0].mxu0  ;;  %v1179_v42 = vpop.f32.mrb[0].mxu1 }
 0x121   : > { %v613_v43 = vpop.f32.mrb[1].mxu0  ;;  %v677_v44 = vpop.f32.mrb[1].mxu1  ;;  %v758_v50 = vmax.f32 %v1179_v42, 0.0  ;;  %v742_v54 = vmax.f32 %v1163_v41, 0.0 }
 0x122   : > { %v756_v45 = vmax.f32 %v677_v44, 0.0  ;;  %v1164_v46 = vpop.f32.mrb[2].mxu0  ;;  %v1180_v47 = vpop.f32.mrb[2].mxu1  ;;  %v740_v51 = vmax.f32 %v613_v43, 0.0 }
 0x123   : > { %v616_v48 = vpop.f32.mrb[3].mxu0  ;;  %v680_v49 = vpop.f32.mrb[3].mxu1  ;;  %v743_v57 = vmax.f32 %v1164_v46, 0.0  ;;  %v759_v58 = vmax.f32 %v1180_v47, 0.0 }
 0x124   : > { %v741_v52 = vmax.f32 %v616_v48, 0.0  ;;  %v757_v53 = vmax.f32 %v680_v49, 0.0 }
 0x126   : > { %v773_v55 = vmax.f32 %v740_v51, %v741_v52  ;;  %v809_v56 = vmax.f32 %v756_v45, %v757_v53 }
 0x128   : > { %v774_v59 = vmax.f32 %v773_v55, %v742_v54  ;;  %v810_v60 = vmax.f32 %v809_v56, %v758_v50  ;;  %v1167_v61 = vpop.f32.mrb[4].mxu0  ;;  %v1183_v62 = vpop.f32.mrb[4].mxu1 }
 0x129   : > { %v629_v63 = vpop.f32.mrb[5].mxu0  ;;  %v693_v0 = vpop.f32.mrb[5].mxu1  ;;  %v762_v6 = vmax.f32 %v1183_v62, 0.0  ;;  %v746_v14 = vmax.f32 %v1167_v61, 0.0 }
 0x12a   : > { %v775_v1 = vmax.f32 %v774_v59, %v743_v57  ;;  %v1483_v2 = vmax.f32 %v810_v60, %v759_v58  ;;  %v760_v3 = vmax.f32 %v693_v0, 0.0  ;;  %v1168_v4 = vpop.f32.mrb[6].mxu0  ;;  %v1184_v5 = vpop.f32.mrb[6].mxu1  ;;  %v744_v10 = vmax.f32 %v629_v63, 0.0 }
 0x12b   : > { %v632_v7 = vpop.f32.mrb[7].mxu0  ;;  %v696_v8 = vpop.f32.mrb[7].mxu1  ;;  %v747_v17 = vmax.f32 %v1168_v4, 0.0  ;;  %v763_v18 = vmax.f32 %v1184_v5, 0.0 }
 0x12c   : > { %v776_v9 = vrot.slane %v775_v1, 4  ;;  %v745_v11 = vmax.f32 %v632_v7, 0.0  ;;  %v761_v12 = vmax.f32 %v696_v8, 0.0  ;;  %v812_v53 = vrot.slane %v1483_v2, 4 }
 0x12e   : > { %v777_v13 = vmax.f32 %v775_v1, %v776_v9  ;;  %v782_v15 = vmax.f32 %v744_v10, %v745_v11  ;;  %v818_v16 = vmax.f32 %v760_v3, %v761_v12  ;;  %v813_v12 = vmax.f32 %v1483_v2, %v812_v53 }
 0x130   : > { %v783_v19 = vmax.f32 %v782_v15, %v746_v14  ;;  %v819_v20 = vmax.f32 %v818_v16, %v762_v6  ;;  %v1171_v21 = vpop.f32.mrb[8].mxu0  ;;  %v1187_v22 = vpop.f32.mrb[8].mxu1  ;;  %v778_v23 = vrot.slane %v777_v13, 2 }
 0x131   : > { %v645_v24 = vpop.f32.mrb[9].mxu0  ;;  %v709_v25 = vpop.f32.mrb[9].mxu1  ;;  %v766_v34 = vmax.f32 %v1187_v22, 0.0  ;;  %v750_v40 = vmax.f32 %v1171_v21, 0.0 }
 0x132   : > { %v784_v26 = vmax.f32 %v783_v19, %v747_v17  ;;  %v820_v27 = vmax.f32 %v819_v20, %v763_v18  ;;  %v1172_v28 = vpop.f32.mrb[10].mxu0  ;;  %v1188_v29 = vpop.f32.mrb[10].mxu1  ;;  %v764_v30 = vmax.f32 %v709_v25, 0.0  ;;  %v779_v35 = vmax.f32 %v777_v13, %v778_v23 }
 0x133   : > { %v648_v31 = vpop.f32.mrb[11].mxu0  ;;  %v712_v32 = vpop.f32.mrb[11].mxu1  ;;  %v748_v36 = vmax.f32 %v645_v24, 0.0  ;;  %v751_v44 = vmax.f32 %v1172_v28, 0.0  ;;  %v767_v48 = vmax.f32 %v1188_v29, 0.0  ;;  %v814_v24 = vrot.slane %v813_v12, 2 }
 0x134   : > { %v785_v33 = vrot.slane %v784_v26, 4  ;;  %v749_v37 = vmax.f32 %v648_v31, 0.0  ;;  %v765_v38 = vmax.f32 %v712_v32, 0.0  ;;  %v780_v47 = vrot.slane %v779_v35, 1 }
 0x135   : > { %v821_v58 = vrot.slane %v820_v27, 4  ;;  %v815_v32 = vmax.f32 %v813_v12, %v814_v24 }
 0x136   : > { %v786_v39 = vmax.f32 %v784_v26, %v785_v33  ;;  %v791_v41 = vmax.f32 %v748_v36, %v749_v37  ;;  %v827_v42 = vmax.f32 %v764_v30, %v765_v38  ;;  %v781_v5 = vmax.f32 %v779_v35, %v780_v47 }
 0x137   : > { %v822_v13 = vmax.f32 %v820_v27, %v821_v58  ;;  %v1296_v58 = vld [vmem:[%s1535_s2] sm:$0xff] (!%p1098_p10)  }
 0x138   : > { %v787_v43 = vrot.slane %v786_v39, 2  ;;  %v1175_v45 = vpop.f32.mrb[12].mxu0  ;;  %v1191_v46 = vpop.f32.mrb[12].mxu1  ;;  %v792_v49 = vmax.f32 %v791_v41, %v750_v40  ;;  %v828_v50 = vmax.f32 %v827_v42, %v766_v34  ;;  %v816_v41 = vrot.slane %v815_v32, 1 }
 0x139   : > { %v661_v51 = vpop.f32.mrb[13].mxu0  ;;  %v725_v52 = vpop.f32.mrb[13].mxu1  ;;  %v770_v61 = vmax.f32 %v1191_v46, 0.0  ;;  %v754_v9 = vmax.f32 %v1175_v45, 0.0  ;;  %v823_v26 = vrot.slane %v822_v13, 2 }
 0x13a   : > { %v788_v54 = vmax.f32 %v786_v39, %v787_v43  ;;  %v768_v55 = vmax.f32 %v725_v52, 0.0  ;;  %v1176_v56 = vpop.f32.mrb[14].mxu0  ;;  %v1192_v57 = vpop.f32.mrb[14].mxu1  ;;  %v793_v59 = vmax.f32 %v792_v49, %v751_v44  ;;  %v829_v60 = vmax.f32 %v828_v50, %v767_v48  ;;  %v772_v52 = vld [vmem:[#allocation2] sm:$0xff] }
 0x13b   : > { %v664_v62 = vpop.f32.mrb[15].mxu0  ;;  %v728_v63 = vpop.f32.mrb[15].mxu1  ;;  %v752_v1 = vmax.f32 %v661_v51, 0.0  ;;  %v755_v15 = vmax.f32 %v1176_v56, 0.0  ;;  %v771_v17 = vmax.f32 %v1192_v57, 0.0  ;;  %v824_v34 = vmax.f32 %v822_v13, %v823_v26 }
 0x13c   : > { %v789_v0 = vrot.slane %v788_v54, 1  ;;  %v753_v3 = vmax.f32 %v664_v62, 0.0  ;;  %v769_v4 = vmax.f32 %v728_v63, 0.0  ;;  %v794_v6 = vrot.slane %v793_v59, 4  ;;  %v1299_v62 = vld [vmem:[%s1535_s2 + $0x18] sm:$0xff] (!%p1098_p10)   ;;  %v1300_v63 = vld [vmem:[%s1535_s2 + $0x20] sm:$0xff] (!%p1098_p10)  }
 0x13d   : > { %v830_v7 = vrot.slane %v829_v60, 4  ;;  %v825_v42 = vrot.slane %v824_v34, 1  ;;  %v817_v47 = vmax.f32 %v815_v32, %v816_v41 }
 0x13e   : > { %v790_v8 = vmax.f32 %v788_v54, %v789_v0  ;;  %v800_v10 = vmax.f32 %v752_v1, %v753_v3  ;;  %v836_v11 = vmax.f32 %v768_v55, %v769_v4  ;;  %v795_v14 = vmax.f32 %v793_v59, %v794_v6  ;;  %v1301_v0 = vld [vmem:[%s1535_s2 + $0x28] sm:$0xff] (!%p1098_p10)   ;;  %v1302_v1 = vld [vmem:[%s1535_s2 + $0x30] sm:$0xff] (!%p1098_p10)   ;;  %v1303_v3 = vld [vmem:[%s1535_s2 + $0x38] sm:$0xff] (!%p1098_p10)  }
 0x13f   : > { %v831_v21 = vmax.f32 %v829_v60, %v830_v7  ;;  %v826_v48 = vmax.f32 %v824_v34, %v825_v42  ;;  %v1349_v59 = vmov (!%p1098_p10), 0.0   ;;  %v1297_v60 = vld [vmem:[%s1535_s2 + $0x8] sm:$0xff] (!%p1098_p10)   ;;  %v1099_v6 = vld [vmem:[%s1536_s3] ss:$0 sm:$0xff] (!%p1098_p10) }
 0x140   : > { %v854_v16 = vsel %vm853_vm0, %v790_v8, %v781_v5  ;;  %v801_v18 = vmax.f32 %v800_v10, %v754_v9  ;;  %v837_v19 = vmax.f32 %v836_v11, %v770_v61  ;;  %v796_v20 = vrot.slane %v795_v14, 2  ;;  %1193 = vmatprep.subr.bf16.mxu0 (!%p1098_p10), %v1349_v59  ;;  %1209 = vmatprep.mubr.msk.bf16.mxu0 (!%p1098_p10), %vm1350_vm7, %v1349_v59  ;;  %v1298_v61 = vld [vmem:[%s1535_s2 + $0x10] sm:$0xff] (!%p1098_p10)  }
 0x141   : > { %v832_v31 = vrot.slane %v831_v21, 2  ;;  %1194 = vmatpush3.bf16.msra.mxu0 (!%p1098_p10), %v1296_v58 }
 0x142   : > { %v802_v22 = vmax.f32 %v801_v18, %v755_v15  ;;  %v838_v23 = vmax.f32 %v837_v19, %v771_v17  ;;  %v797_v25 = vmax.f32 %v795_v14, %v796_v20  ;;  %1195 = vmatprep.subr.bf16.mxu0 (!%p1098_p10), %v1349_v59 }
 0x143   : > { %v833_v38 = vmax.f32 %v831_v21, %v832_v31 }
 0x144   : > { %v803_v28 = vrot.slane %v802_v22, 4  ;;  %v839_v29 = vrot.slane %v838_v23, 4  ;;  %v798_v30 = vrot.slane %v797_v25, 1 }
 0x145   : > { %v834_v44 = vrot.slane %v833_v38, 1  ;;  %1196 = vmatpush3.bf16.msra.mxu0 (!%p1098_p10), %v1297_v60 }
 0x146   : > { %v804_v2 = vmax.f32 %v802_v22, %v803_v28  ;;  %v840_v27 = vmax.f32 %v838_v23, %v839_v29  ;;  %v799_v33 = vmax.f32 %v797_v25, %v798_v30  ;;  %1197 = vmatprep.subr.bf16.mxu0 (!%p1098_p10), %v1349_v59 }
 0x147   : > { %v835_v50 = vmax.f32 %v833_v38, %v834_v44 }
 0x148   : > { %v805_v35 = vrot.slane %v804_v2, 2  ;;  %v841_v36 = vrot.slane %v840_v27, 2  ;;  %v856_v37 = vsel %vm855_vm1, %v799_v33, %v854_v16 }
 0x149   : > { %1198 = vmatpush3.bf16.msra.mxu0 (!%p1098_p10), %v1298_v61 }
 0x14a   : > { %v806_v39 = vmax.f32 %v804_v2, %v805_v35  ;;  %v842_v40 = vmax.f32 %v840_v27, %v841_v36  ;;  %1199 = vmatprep.subr.bf16.mxu0 (!%p1098_p10), %v1349_v59 }
 0x14c   : > { %v807_v43 = vrot.slane %v806_v39, 1  ;;  %v843_v46 = vrot.slane %v842_v40, 1 }
 0x14d   : > { %1200 = vmatpush3.bf16.msra.mxu0 (!%p1098_p10), %v1299_v62 }
 0x14e   : > { %v808_v45 = vmax.f32 %v806_v39, %v807_v43  ;;  %v844_v53 = vmax.f32 %v842_v40, %v843_v46  ;;  %1201 = vmatprep.subr.bf16.mxu0 (!%p1098_p10), %v1349_v59 }
 0x150   : > { %v858_v49 = vsel %vm857_vm2, %v808_v45, %v856_v37 }
 0x151   : > { %v860_v51 = vsel %vm859_vm3, %v817_v47, %v858_v49  ;;  %873 = sbr.rel (%p1098_p10) target bundleno = 880 (0x370), region = 85  ;;  %1202 = vmatpush3.bf16.msra.mxu0 (!%p1098_p10), %v1300_v63 }
 0x152   : > { %v862_v54 = vsel %vm861_vm4, %v826_v48, %v860_v51  ;;  %1203 = vmatprep.subr.bf16.mxu0 (!%p1098_p10), %v1349_v59 }
 0x153   : > { %v864_v55 = vsel %vm863_vm5, %v835_v50, %v862_v54 }
 0x154   : > { %v866_v56 = vsel %vm865_vm6, %v844_v53, %v864_v55 }
 0x155   : > { %v868_v57 = vmax.f32 %v772_v52, %v866_v56  ;;  %1204 = vmatpush3.bf16.msra.mxu0 (!%p1098_p10), %v1301_v0 }
 0x156   : > { %1205 = vmatprep.subr.bf16.mxu0 (!%p1098_p10), %v1349_v59 }
 0x157   : > { %869 = vst [vmem:[#allocation2] sm:$0xff] %v868_v57 }
 0x159   : > { %1206 = vmatpush3.bf16.msra.mxu0 %v1302_v1 }
 0x15a   : > { %1207 = vmatprep.subr.bf16.mxu0 %v1349_v59 }
 0x15d   : > { %1208 = vmatpush3.bf16.msra.mxu0 %v1303_v3 }
 0x15e   : > { %v874_v4 = vld [vmem:[#allocation2] sm:$0xff] }
 0x15f   : > { %v875_v5 = vpack.c.bf16 %v874_v4, %v874_v4 }
 0x161   : > { %1210 = vmatmul.mubr.bf16.vlgmr.msra.gmra.mrb[0].mxu0 %v875_v5 }
 0x234   : > { %v981_v7 = vpop.f32.mrb[0].mxu0 }
 0x235   : > { %v982_v8 = vadd.f32 %v1099_v6, %v981_v7  ;;  %v1211_v9 = vpop.f32.mrb[1].mxu0 }
 0x236   : > { %v984_v10 = vpop.f32.mrb[2].mxu0 }
 0x237   : > { %987 = vmax.xlane.f32.xlu0 %v982_v8  ;;  %v1212_v11 = vpop.f32.mrb[3].mxu0 }
 0x2c4   : > { %v988_v12 = vpop.xlane.xlu0 %987 }
 0x2c5   : > { %v989_v13 = vsub.f32 %v982_v8, %v988_v12 }
 0x2c7   : > { %v990_v14 = vmul.f32 1.442695, %v989_v13 }
 0x2c9   : > { %1304 = vpow2.f32 %v990_v14 }
 0x2d3   : > { %v1305_v15 = vpop.eup %1304 }
 0x2d4   : > { %992 = vadd.xlane.f32.xlu0 %v1305_v15 }
 0x361   : > { %v993_v16 = vpop.xlane.xlu0 %992 }
 0x362   : > { %1306 = vrcp.f32 %v993_v16 }
 0x36c   : > { %v1307_v17 = vpop.eup %1306 }
 0x36d   : > { %v995_v18 = vmul.f32 %v1307_v17, %v1305_v15 }
 0x36f   : > { %996 = vst [vmem:[%s1537_s4] sm:$0xff] %v995_v18 }
 0x370 PF: > { %s14_s19 = sadd.s32 1, %s1346_s19   ;;  %s1538_s15 = smov %s1334_s16 }
 0x371   : > { %p11_p11 = scmp.ge.s32.totalorder %s14_s19, 6   ;;  %s1539_s16 = smov %s1411_s23 }
 0x372   : > { %s1540_s17 = smov %s1342_s18  ;;  %s1541_s18 = smov %s1543_s20 }
 0x373   :  { %13 = sbr.rel (!%p11_p11) target bundleno = 3 (0x3), region = 120 }

</bundles_post_ra>
